<compile_context>
chip_gen: v5e
topology: v5e:2x2
jax: 0.10.0
libtpu: 0.0.40
codegen_flags: <defaults>
</compile_context>

<pallas_src>
from functools import partial

import numpy as np
import jax
import jax.numpy as jnp
from jax.experimental import pallas as pl
from jax.experimental.pallas import tpu as pltpu


# ----------------------------------------------------------------------------
# Fused multi-head attention (projections + softmax(QK^T/temp)V + fc + residual)
# ----------------------------------------------------------------------------
def _mha_kernel(x_ref, kv_ref, wq_ref, wk_ref, wv_ref, wfc_ref, o_ref,
                *, n_head, d_k, d_v, temperature):
    x = x_ref[...].astype(jnp.float32)     # (tq, D)   query-side input (also residual)
    kv = kv_ref[...].astype(jnp.float32)   # (Lk, D)   key/value-side input

    q = jnp.dot(x, wq_ref[...], preferred_element_type=jnp.float32)    # (tq, H*dk)
    k = jnp.dot(kv, wk_ref[...], preferred_element_type=jnp.float32)   # (Lk, H*dk)
    v = jnp.dot(kv, wv_ref[...], preferred_element_type=jnp.float32)   # (Lk, H*dv)

    inv_t = 1.0 / temperature
    out = x                                 # residual
    # Static unroll over heads (n_head is small). concat(heads) @ Wfc is computed as
    # sum_h  O_h @ Wfc[h*dv:(h+1)*dv, :]  to avoid an in-kernel concatenate/relayout.
    for h in range(n_head):
        qh = q[:, h * d_k:(h + 1) * d_k] * inv_t          # (tq, dk)  q / temperature
        kh = k[:, h * d_k:(h + 1) * d_k]                   # (Lk, dk)
        vh = v[:, h * d_v:(h + 1) * d_v]                   # (Lk, dv)

        s = jnp.einsum("qd,kd->qk", qh, kh,
                       preferred_element_type=jnp.float32)  # (tq, Lk)
        s = s - jnp.max(s, axis=-1, keepdims=True)
        p = jnp.exp(s)
        p = p / jnp.sum(p, axis=-1, keepdims=True)          # softmax over keys

        oh = jnp.dot(p, vh, preferred_element_type=jnp.float32)           # (tq, dv)
        out = out + jnp.dot(oh, wfc_ref[h * d_v:(h + 1) * d_v, :],
                            preferred_element_type=jnp.float32)           # (tq, D)

    o_ref[...] = out.astype(o_ref.dtype)


def mha(x, kv, wq, wk, wv, wfc, *, n_head, d_k, d_v, block_q=256):
    """x: (B, Lq, D) queries; kv: (B, Lk, D) key/value source. Returns (B, Lq, D)."""
    B, Lq, D = x.shape
    _, Lk, Dk = kv.shape
    assert Dk == D
    temperature = float(d_k) ** 0.5

    # Tile the query axis only when it is big and divides evenly; otherwise use the
    # full sequence (full-array last-two-dims blocks are exempt from the (8,128) rule).
    tq = block_q if (Lq > block_q and Lq % block_q == 0) else Lq
    grid = (B, Lq // tq)

    kernel = partial(_mha_kernel, n_head=n_head, d_k=d_k, d_v=d_v,
                     temperature=temperature)
    return pl.pallas_call(
        kernel,
        out_shape=jax.ShapeDtypeStruct((B, Lq, D), x.dtype),
        grid=grid,
        in_specs=[
            # batch dim squeezed -> 2-D refs in the kernel
            pl.BlockSpec((None, tq, D), lambda b, i: (b, i, 0)),
            pl.BlockSpec((None, Lk, D), lambda b, i: (b, 0, 0)),   # reused across q-tiles
            pl.BlockSpec((D, n_head * d_k), lambda b, i: (0, 0)),  # weights: constant
            pl.BlockSpec((D, n_head * d_k), lambda b, i: (0, 0)),  #   index_map -> no
            pl.BlockSpec((D, n_head * d_v), lambda b, i: (0, 0)),  #   re-DMA per step
            pl.BlockSpec((n_head * d_v, D), lambda b, i: (0, 0)),
        ],
        out_specs=pl.BlockSpec((None, tq, D), lambda b, i: (b, i, 0)),
        compiler_params=pltpu.CompilerParams(
            dimension_semantics=("parallel", "parallel"),
        ),
    )(x, kv, wq, wk, wv, wfc)


# ----------------------------------------------------------------------------
# Fused position-wise feed-forward:  relu(x @ W1 + b1) @ W2 + b2 + x
# ----------------------------------------------------------------------------
def _ffn_kernel(x_ref, w1_ref, b1_ref, w2_ref, b2_ref, o_ref):
    x = x_ref[...].astype(jnp.float32)                                      # (tq, D)
    h = jnp.dot(x, w1_ref[...], preferred_element_type=jnp.float32) + b1_ref[...]
    h = jnp.maximum(h, 0.0)
    y = jnp.dot(h, w2_ref[...], preferred_element_type=jnp.float32) + b2_ref[...]
    o_ref[...] = (y + x).astype(o_ref.dtype)


def ffn(x, w1, b1, w2, b2, *, block_q=256):
    B, Lq, D = x.shape
    d_inner = w1.shape[1]
    tq = block_q if (Lq > block_q and Lq % block_q == 0) else Lq
    grid = (B, Lq // tq)

    return pl.pallas_call(
        _ffn_kernel,
        out_shape=jax.ShapeDtypeStruct((B, Lq, D), x.dtype),
        grid=grid,
        in_specs=[
            pl.BlockSpec((None, tq, D), lambda b, i: (b, i, 0)),
            pl.BlockSpec((D, d_inner), lambda b, i: (0, 0)),
            pl.BlockSpec((1, d_inner), lambda b, i: (0, 0)),
            pl.BlockSpec((d_inner, D), lambda b, i: (0, 0)),
            pl.BlockSpec((1, D), lambda b, i: (0, 0)),
        ],
        out_specs=pl.BlockSpec((None, tq, D), lambda b, i: (b, i, 0)),
        compiler_params=pltpu.CompilerParams(
            dimension_semantics=("parallel", "parallel"),
        ),
    )(x, w1, b1, w2, b2)


# ----------------------------------------------------------------------------
# Decoder forward (norm=False, inference): stack of DecoderLayers
# ----------------------------------------------------------------------------
def decoder_forward(dec_input, enc_output, params, *, n_head, d_k, d_v):
    out = dec_input
    for layer in params:
        out = mha(out, out, **layer["slf"], n_head=n_head, d_k=d_k, d_v=d_v)
        out = mha(out, enc_output, **layer["enc"], n_head=n_head, d_k=d_k, d_v=d_v)
        out = ffn(out, **layer["ffn"])
    return out


# ----------------------------------------------------------------------------
# Pure-JAX reference (same math as the PyTorch module in eval mode)
# ----------------------------------------------------------------------------
def _ref_mha(x, kv, wq, wk, wv, wfc, n_head, d_k, d_v):
    B, Lq, D = x.shape
    Lk = kv.shape[1]
    temperature = float(d_k) ** 0.5
    q = (x @ wq).reshape(B, Lq, n_head, d_k).transpose(0, 2, 1, 3) / temperature
    k = (kv @ wk).reshape(B, Lk, n_head, d_k).transpose(0, 2, 1, 3)
    v = (kv @ wv).reshape(B, Lk, n_head, d_v).transpose(0, 2, 1, 3)
    attn = jax.nn.softmax(jnp.einsum("bhqd,bhkd->bhqk", q, k), axis=-1)
    o = jnp.einsum("bhqk,bhkd->bhqd", attn, v).transpose(0, 2, 1, 3)
    o = o.reshape(B, Lq, n_head * d_v)
    return o @ wfc + x


def _ref_ffn(x, w1, b1, w2, b2):
    return jax.nn.relu(x @ w1 + b1) @ w2 + b2 + x


def ref_decoder_forward(dec_input, enc_output, params, *, n_head, d_k, d_v):
    out = dec_input
    for layer in params:
        out = _ref_mha(out, out, n_head=n_head, d_k=d_k, d_v=d_v, **layer["slf"])
        out = _ref_mha(out, enc_output, n_head=n_head, d_k=d_k, d_v=d_v, **layer["enc"])
        out = _ref_ffn(out, **layer["ffn"])
    return out


if __name__ == "__main__":
    # Small shapes consistent with the module: batch=2, seq=8, views=8, hidden=32.
    B, Lq, Lv = 2, 8, 8
    d_model, d_inner = 32, 64
    n_layers, n_head, d_k, d_v = 2, 2, 16, 16

    key = jax.random.PRNGKey(0)
    key, k_dec, k_enc = jax.random.split(key, 3)
    dec_input = jax.random.normal(k_dec, (B, Lq, d_model), dtype=jnp.float32)
    enc_output = jax.random.normal(k_enc, (B, Lv, d_model), dtype=jnp.float32)

    def _rnd(k, shape):
        return 0.1 * jax.random.normal(k, shape, dtype=jnp.float32)

    params = []
    for _ in range(n_layers):
        key, *ks = jax.random.split(key, 13)
        params.append({
            "slf": dict(wq=_rnd(ks[0], (d_model, n_head * d_k)),
                        wk=_rnd(ks[1], (d_model, n_head * d_k)),
                        wv=_rnd(ks[2], (d_model, n_head * d_v)),
                        wfc=_rnd(ks[3], (n_head * d_v, d_model))),
            "enc": dict(wq=_rnd(ks[4], (d_model, n_head * d_k)),
                        wk=_rnd(ks[5], (d_model, n_head * d_k)),
                        wv=_rnd(ks[6], (d_model, n_head * d_v)),
                        wfc=_rnd(ks[7], (n_head * d_v, d_model))),
            "ffn": dict(w1=_rnd(ks[8], (d_model, d_inner)),
                        b1=_rnd(ks[9], (1, d_inner)),
                        w2=_rnd(ks[10], (d_inner, d_model)),
                        b2=_rnd(ks[11], (1, d_model))),
        })

    out = decoder_forward(dec_input, enc_output, params,
                          n_head=n_head, d_k=d_k, d_v=d_v)
    out = jax.block_until_ready(out)

    ref = ref_decoder_forward(dec_input, enc_output, params,
                              n_head=n_head, d_k=d_k, d_v=d_v)
    np.testing.assert_allclose(np.asarray(out), np.asarray(ref), rtol=2e-3, atol=2e-3)

    print("KERNEL_OK")
</pallas_src>

<mosaic_0001>
module attributes {stable_mosaic.version = 11 : i64} {
  func.func @_mha_kernel(%arg0: i32, %arg1: i32, %arg2: memref<1x8x32xf32, #tpu.memory_space<vmem>>, %arg3: memref<1x8x32xf32, #tpu.memory_space<vmem>>, %arg4: memref<32x32xf32, #tpu.memory_space<vmem>>, %arg5: memref<32x32xf32, #tpu.memory_space<vmem>>, %arg6: memref<32x32xf32, #tpu.memory_space<vmem>>, %arg7: memref<32x32xf32, #tpu.memory_space<vmem>>, %arg8: memref<1x8x32xf32, #tpu.memory_space<vmem>>) attributes {dimension_semantics = [#tpu.dimension_semantics<parallel>, #tpu.dimension_semantics<parallel>], iteration_bounds = array<i64: 2, 1>, scalar_prefetch = 0 : i64, scratch_operands = 0 : i64, tpu.core_type = #tpu.core_type<tc>, window_params = [{transform_indices = @transform_0, window_bounds = array<i64: 1, 8, 32>}, {transform_indices = @transform_1, window_bounds = array<i64: 1, 8, 32>}, {pipeline_mode = #tpu.pipeline_mode<synchronous>, transform_indices = @transform_2, window_bounds = array<i64: 32, 32>}, {pipeline_mode = #tpu.pipeline_mode<synchronous>, transform_indices = @transform_3, window_bounds = array<i64: 32, 32>}, {pipeline_mode = #tpu.pipeline_mode<synchronous>, transform_indices = @transform_4, window_bounds = array<i64: 32, 32>}, {pipeline_mode = #tpu.pipeline_mode<synchronous>, transform_indices = @transform_5, window_bounds = array<i64: 32, 32>}, {transform_indices = @transform_6, window_bounds = array<i64: 1, 8, 32>}]} {
    %c0 = arith.constant 0 : index
    %c0_0 = arith.constant 0 : index
    %c0_1 = arith.constant 0 : index
    %0 = vector.load %arg2[%c0, %c0_0, %c0_1] : memref<1x8x32xf32, #tpu.memory_space<vmem>>, vector<1x8x32xf32>
    %1 = vector.shape_cast %0 : vector<1x8x32xf32> to vector<8x32xf32>
    %c0_2 = arith.constant 0 : index
    %c0_3 = arith.constant 0 : index
    %c0_4 = arith.constant 0 : index
    %2 = vector.load %arg3[%c0_2, %c0_3, %c0_4] : memref<1x8x32xf32, #tpu.memory_space<vmem>>, vector<1x8x32xf32>
    %3 = vector.shape_cast %2 : vector<1x8x32xf32> to vector<8x32xf32>
    %c0_5 = arith.constant 0 : index
    %c0_6 = arith.constant 0 : index
    %4 = vector.load %arg4[%c0_5, %c0_6] : memref<32x32xf32, #tpu.memory_space<vmem>>, vector<32x32xf32>
    %cst = arith.constant dense<0.000000e+00> : vector<8x32xf32>
    %5 = tpu.matmul %1, %4, %cst {dimension_numbers = #tpu.dot_dimension_numbers<[1], [0], [0], [1], [0, 0, 1, 1], [], []>} : vector<8x32xf32>, vector<32x32xf32>, vector<8x32xf32> -> vector<8x32xf32>
    %c0_7 = arith.constant 0 : index
    %c0_8 = arith.constant 0 : index
    %6 = vector.load %arg5[%c0_7, %c0_8] : memref<32x32xf32, #tpu.memory_space<vmem>>, vector<32x32xf32>
    %cst_9 = arith.constant dense<0.000000e+00> : vector<8x32xf32>
    %7 = tpu.matmul %3, %6, %cst_9 {dimension_numbers = #tpu.dot_dimension_numbers<[1], [0], [0], [1], [0, 0, 1, 1], [], []>} : vector<8x32xf32>, vector<32x32xf32>, vector<8x32xf32> -> vector<8x32xf32>
    %c0_10 = arith.constant 0 : index
    %c0_11 = arith.constant 0 : index
    %8 = vector.load %arg6[%c0_10, %c0_11] : memref<32x32xf32, #tpu.memory_space<vmem>>, vector<32x32xf32>
    %cst_12 = arith.constant dense<0.000000e+00> : vector<8x32xf32>
    %9 = tpu.matmul %3, %8, %cst_12 {dimension_numbers = #tpu.dot_dimension_numbers<[1], [0], [0], [1], [0, 0, 1, 1], [], []>} : vector<8x32xf32>, vector<32x32xf32>, vector<8x32xf32> -> vector<8x32xf32>
    %10 = vector.extract_strided_slice %5 {offsets = [0, 0], sizes = [8, 16], strides = [1, 1]} : vector<8x32xf32> to vector<8x16xf32>
    %cst_13 = arith.constant 2.500000e-01 : f32
    %11 = vector.broadcast %cst_13 : f32 to vector<8x16xf32>
    %12 = arith.mulf %10, %11 : vector<8x16xf32>
    %13 = vector.extract_strided_slice %7 {offsets = [0, 0], sizes = [8, 16], strides = [1, 1]} : vector<8x32xf32> to vector<8x16xf32>
    %14 = vector.extract_strided_slice %9 {offsets = [0, 0], sizes = [8, 16], strides = [1, 1]} : vector<8x32xf32> to vector<8x16xf32>
    "tpu.trace_start"() <{level = 10 : i32, message = "qd,kd->qk"}> : () -> ()
    %cst_14 = arith.constant dense<0.000000e+00> : vector<8x8xf32>
    %15 = tpu.matmul %12, %13, %cst_14 {dimension_numbers = #tpu.dot_dimension_numbers<[1], [1], [0], [0], [0, 0, 1, 0], [], []>} : vector<8x16xf32>, vector<8x16xf32>, vector<8x8xf32> -> vector<8x8xf32>
    "tpu.trace_stop"() : () -> ()
    %cst_15 = arith.constant dense<0xFF800000> : vector<8xf32>
    %16 = vector.multi_reduction <maximumf>, %15, %cst_15 [1] : vector<8x8xf32> to vector<8xf32>
    %17 = vector.shape_cast %16 : vector<8xf32> to vector<8x1xf32>
    %18 = vector.broadcast %17 : vector<8x1xf32> to vector<8x8xf32>
    %19 = arith.subf %15, %18 : vector<8x8xf32>
    %20 = math.exp %19 : vector<8x8xf32>
    %cst_16 = arith.constant dense<0.000000e+00> : vector<8xf32>
    %21 = vector.multi_reduction <add>, %20, %cst_16 [1] : vector<8x8xf32> to vector<8xf32>
    %22 = vector.shape_cast %21 : vector<8xf32> to vector<8x1xf32>
    %23 = vector.broadcast %22 : vector<8x1xf32> to vector<8x8xf32>
    %24 = arith.divf %20, %23 : vector<8x8xf32>
    %cst_17 = arith.constant dense<0.000000e+00> : vector<8x16xf32>
    %25 = tpu.matmul %24, %14, %cst_17 {dimension_numbers = #tpu.dot_dimension_numbers<[1], [0], [0], [1], [0, 0, 1, 1], [], []>} : vector<8x8xf32>, vector<8x16xf32>, vector<8x16xf32> -> vector<8x16xf32>
    %c0_18 = arith.constant 0 : index
    %c0_19 = arith.constant 0 : index
    %26 = vector.load %arg7[%c0_18, %c0_19] : memref<32x32xf32, #tpu.memory_space<vmem>>, vector<16x32xf32>
    %cst_20 = arith.constant dense<0.000000e+00> : vector<8x32xf32>
    %27 = tpu.matmul %25, %26, %cst_20 {dimension_numbers = #tpu.dot_dimension_numbers<[1], [0], [0], [1], [0, 0, 1, 1], [], []>} : vector<8x16xf32>, vector<16x32xf32>, vector<8x32xf32> -> vector<8x32xf32>
    %28 = arith.addf %1, %27 : vector<8x32xf32>
    %29 = vector.extract_strided_slice %5 {offsets = [0, 16], sizes = [8, 16], strides = [1, 1]} : vector<8x32xf32> to vector<8x16xf32>
    %cst_21 = arith.constant 2.500000e-01 : f32
    %30 = vector.broadcast %cst_21 : f32 to vector<8x16xf32>
    %31 = arith.mulf %29, %30 : vector<8x16xf32>
    %32 = vector.extract_strided_slice %7 {offsets = [0, 16], sizes = [8, 16], strides = [1, 1]} : vector<8x32xf32> to vector<8x16xf32>
    %33 = vector.extract_strided_slice %9 {offsets = [0, 16], sizes = [8, 16], strides = [1, 1]} : vector<8x32xf32> to vector<8x16xf32>
    "tpu.trace_start"() <{level = 10 : i32, message = "qd,kd->qk"}> : () -> ()
    %cst_22 = arith.constant dense<0.000000e+00> : vector<8x8xf32>
    %34 = tpu.matmul %31, %32, %cst_22 {dimension_numbers = #tpu.dot_dimension_numbers<[1], [1], [0], [0], [0, 0, 1, 0], [], []>} : vector<8x16xf32>, vector<8x16xf32>, vector<8x8xf32> -> vector<8x8xf32>
    "tpu.trace_stop"() : () -> ()
    %cst_23 = arith.constant dense<0xFF800000> : vector<8xf32>
    %35 = vector.multi_reduction <maximumf>, %34, %cst_23 [1] : vector<8x8xf32> to vector<8xf32>
    %36 = vector.shape_cast %35 : vector<8xf32> to vector<8x1xf32>
    %37 = vector.broadcast %36 : vector<8x1xf32> to vector<8x8xf32>
    %38 = arith.subf %34, %37 : vector<8x8xf32>
    %39 = math.exp %38 : vector<8x8xf32>
    %cst_24 = arith.constant dense<0.000000e+00> : vector<8xf32>
    %40 = vector.multi_reduction <add>, %39, %cst_24 [1] : vector<8x8xf32> to vector<8xf32>
    %41 = vector.shape_cast %40 : vector<8xf32> to vector<8x1xf32>
    %42 = vector.broadcast %41 : vector<8x1xf32> to vector<8x8xf32>
    %43 = arith.divf %39, %42 : vector<8x8xf32>
    %cst_25 = arith.constant dense<0.000000e+00> : vector<8x16xf32>
    %44 = tpu.matmul %43, %33, %cst_25 {dimension_numbers = #tpu.dot_dimension_numbers<[1], [0], [0], [1], [0, 0, 1, 1], [], []>} : vector<8x8xf32>, vector<8x16xf32>, vector<8x16xf32> -> vector<8x16xf32>
    %c16 = arith.constant 16 : index
    %c0_26 = arith.constant 0 : index
    %45 = vector.load %arg7[%c16, %c0_26] : memref<32x32xf32, #tpu.memory_space<vmem>>, vector<16x32xf32>
    %cst_27 = arith.constant dense<0.000000e+00> : vector<8x32xf32>
    %46 = tpu.matmul %44, %45, %cst_27 {dimension_numbers = #tpu.dot_dimension_numbers<[1], [0], [0], [1], [0, 0, 1, 1], [], []>} : vector<8x16xf32>, vector<16x32xf32>, vector<8x32xf32> -> vector<8x32xf32>
    %47 = arith.addf %28, %46 : vector<8x32xf32>
    %c0_28 = arith.constant 0 : index
    %c0_29 = arith.constant 0 : index
    %c0_30 = arith.constant 0 : index
    %48 = vector.load %arg8[%c0_28, %c0_29, %c0_30] : memref<1x8x32xf32, #tpu.memory_space<vmem>>, vector<1x8x32xf32>
    %49 = vector.shape_cast %48 : vector<1x8x32xf32> to vector<8x32xf32>
    %50 = vector.shape_cast %47 : vector<8x32xf32> to vector<1x8x32xf32>
    tpu.vector_store %arg8[%c0_28, %c0_29, %c0_30], %50 {strides = array<i32>} : memref<1x8x32xf32, #tpu.memory_space<vmem>>, vector<1x8x32xf32>,
    return
  }
  func.func @transform_0(%arg0: i32, %arg1: i32) -> (i32, i32, i32) {
    %c0_i32 = arith.constant 0 : i32
    %c0_i32_0 = arith.constant 0 : i32
    return %arg0, %arg1, %c0_i32 : i32, i32, i32
  }
  func.func @transform_1(%arg0: i32, %arg1: i32) -> (i32, i32, i32) {
    %c0_i32 = arith.constant 0 : i32
    %c0_i32_0 = arith.constant 0 : i32
    %c0_i32_1 = arith.constant 0 : i32
    return %arg0, %c0_i32, %c0_i32_0 : i32, i32, i32
  }
  func.func @transform_2(%arg0: i32, %arg1: i32) -> (i32, i32) {
    %c0_i32 = arith.constant 0 : i32
    %c0_i32_0 = arith.constant 0 : i32
    %c0_i32_1 = arith.constant 0 : i32
    return %c0_i32, %c0_i32_0 : i32, i32
  }
  func.func @transform_3(%arg0: i32, %arg1: i32) -> (i32, i32) {
    %c0_i32 = arith.constant 0 : i32
    %c0_i32_0 = arith.constant 0 : i32
    %c0_i32_1 = arith.constant 0 : i32
    return %c0_i32, %c0_i32_0 : i32, i32
  }
  func.func @transform_4(%arg0: i32, %arg1: i32) -> (i32, i32) {
    %c0_i32 = arith.constant 0 : i32
    %c0_i32_0 = arith.constant 0 : i32
    %c0_i32_1 = arith.constant 0 : i32
    return %c0_i32, %c0_i32_0 : i32, i32
  }
  func.func @transform_5(%arg0: i32, %arg1: i32) -> (i32, i32) {
    %c0_i32 = arith.constant 0 : i32
    %c0_i32_0 = arith.constant 0 : i32
    %c0_i32_1 = arith.constant 0 : i32
    return %c0_i32, %c0_i32_0 : i32, i32
  }
  func.func @transform_6(%arg0: i32, %arg1: i32) -> (i32, i32, i32) {
    %c0_i32 = arith.constant 0 : i32
    %c0_i32_0 = arith.constant 0 : i32
    return %arg0, %arg1, %c0_i32 : i32, i32, i32
  }
}

</mosaic_0001>

<bundles_post_ra>
// kernel: tpu_custom_call.1
= control target key start
LH: loop header
LB: loop body
LE: loop exit
PB: predicated region body
PF: predicated region fallthrough
CT: control target
= control target key end

     0   :  { %s1520_s0 = inlined_call_operand.hbm [shape: f32[2,8,32], index: 0, kind: input, shape index: {}]   ;;  %s1521_s1 = inlined_call_operand.hbm [shape: f32[2,8,32], index: 1, kind: input, shape index: {}]   ;;  %s1522_s2 = inlined_call_operand.hbm [shape: f32[32,32], index: 2, kind: input, shape index: {}]   ;;  %s1523_s3 = inlined_call_operand.hbm [shape: f32[32,32], index: 3, kind: input, shape index: {}]   ;;  %s1524_s4 = inlined_call_operand.hbm [shape: f32[32,32], index: 4, kind: input, shape index: {}]   ;;  %s1525_s5 = inlined_call_operand.hbm [shape: f32[32,32], index: 5, kind: input, shape index: {}]   ;;  %s1526_s6 = inlined_call_operand.hbm [shape: f32[2,8,32], index: 6, kind: output, shape index: {}]  }
   0x1   :  { %1529 = sst [smem:[#allocation23_spill]] %s1522_s2 }
   0x2   :  { %1530 = sst [smem:[#allocation24_spill]] %s1523_s3 }
   0x3   :  { %1531 = sst [smem:[#allocation25_spill]] %s1524_s4 }
   0x4   :  { %1532 = sst [smem:[#allocation26_spill]] %s1525_s5 }
   0x5   :  { %11 = vsyncpa [#allocation3], 0 }
   0x6   :  { %13 = vsyncpa [#allocation3 + $0x1], 0 }
   0x7   :  { %14 = vsyncpa [#allocation6], 0 }
   0x8   :  { %16 = vsyncpa [#allocation6 + $0x1], 0 }
   0x9   :  { %17 = vsyncpa [#allocation9], 0 }
   0xa   :  { %18 = vsyncpa [#allocation12], 0 }
   0xb   :  { %19 = vsyncpa [#allocation4], 0 }
   0xc   :  { %21 = vsyncpa [#allocation4 + $0x1], 0  ;;  %s1314_s21 = smov 0   ;;  %s1316_s22 = smov 0  }
   0xd   :  { %s1318_s23 = smov 0   ;;  %s1320_s24 = smov 0  }
   0xe   :  { %s1322_s25 = smov 0   ;;  %s1324_s26 = smov 0  }
   0xf LB: > { %1533 = sst [smem:[#allocation20_spill]] %s1266_s25  ;;  %s1345_s27 = sadd.s32 4294967295, %s1270_s26   ;;  %s1270_s26 = sphi %s1324_s26, %s27_s26   ;;  %s1266_s25 = sphi %s1322_s25, %s1548_s25   ;;  %s1262_s24 = sphi %s1320_s24, %s1547_s24   ;;  %s1258_s23 = sphi %s1318_s23, %s1551_s23   ;;  %s1254_s22 = sphi %s1316_s22, %s1550_s22   ;;  %s1250_s21 = sphi %s1314_s21, %s1549_s21  }
  0x10   : > { %p840_p0 = scmp.ge.s32.totalorder %s1270_s26, 1  ;;  %p62_p1 = scmp.eq.s32.totalorder %s1345_s27, 0 }
  0x11   : > { %p210_p2 = scmp.lt.s32.totalorder %s1270_s26, 3  ;;  %s1534_s2 = sld [smem:[#allocation23_spill]] }
  0x12   : > { %s1272_s8 = smov [#allocation7]   ;;  %p845_p6 = scmp.ge.s32.totalorder %s1270_s26, 2 }
  0x13   : > { %p1353_p3 = pnand %p840_p0, %p210_p2  ;;  %s223_s9 = sshll.u32 %s1272_s8, 4  ;;  %s224_s9 = int_to_ptr.vmem [resolvable:$true] %s223_s9 }
  0x14   : > { %s1537_s3 = sld [smem:[#allocation24_spill]]  ;;  %s1273_s14 = smov 128  }
  0x15   : > { %p895_p4 = pneg %p1353_p3  ;;  %s1274_s15 = smov 8  }
  0x16   : > { %s1275_s16 = smov [#allocation8]   ;;  %s1538_s4 = sld [smem:[#allocation25_spill]] }
  0x17   : > { %s221_s30 = sshll.u32 %s1534_s2, 4  ;;  %p1361_p5 = pnand %p895_p4, %p62_p1  ;;  %s222_s30 = int_to_ptr.hbm [resolvable:$true] %s221_s30 }
  0x18   : > { %s237_s17 = sshll.u32 %s1275_s16, 4  ;;  %s1539_s5 = sld [smem:[#allocation26_spill]]  ;;  %s238_s17 = int_to_ptr.vmem [resolvable:$true] %s237_s17 }
  0x19   : > { %898 = dma.hbm_to_vmem [thread:$0]  (!%p1361_p5), %s222_s30, 512, %s224_s9, [#allocation6], %s1273_s14, %s1273_s14, %s1274_s15  }
  0x1a   : > { %s235_s13 = sshll.u32 %s1537_s3, 4  ;;  %s1276_s8 = smov [#allocation10]   ;;  %s236_s13 = int_to_ptr.hbm [resolvable:$true] %s235_s13 }
  0x1b   : > { %901 = dma.hbm_to_vmem [thread:$0]  (!%p1361_p5), %s236_s13, 512, %s238_s17, [#allocation9], %s1273_s14, %s1273_s14, %s1274_s15  }
  0x1c   : > { %s249_s20 = sshll.u32 %s1538_s4, 4  ;;  %s251_s9 = sshll.u32 %s1276_s8, 4  ;;  %s250_s20 = int_to_ptr.hbm [resolvable:$true] %s249_s20  ;;  %s252_s9 = int_to_ptr.vmem [resolvable:$true] %s251_s9 }
  0x1d   : > { %904 = dma.hbm_to_vmem [thread:$0]  (!%p1361_p5), %s250_s20, 512, %s252_s9, [#allocation9], %s1273_s14, %s1273_s14, %s1274_s15  }
  0x1e   : > { %s263_s30 = sshll.u32 %s1539_s5, 4  ;;  %s1277_s11 = smov [#allocation11]   ;;  %s264_s30 = int_to_ptr.hbm [resolvable:$true] %s263_s30 }
  0x1f   : > { %s265_s12 = sshll.u32 %s1277_s11, 4  ;;  %s839_s13 = sadd.s32 4294967294, %s1270_s26   ;;  %s266_s12 = int_to_ptr.vmem [resolvable:$true] %s265_s12 }
  0x20   : > { %907 = dma.hbm_to_vmem [thread:$0]  (!%p1361_p5), %s264_s30, 512, %s266_s12, [#allocation12], %s1273_s14, %s1273_s14, %s1274_s15  }
  0x21   : > { %s39_s16 = sadd.s32 1, %s1266_s25  ;;  %s48_s17 = sadd.s32 1, %s1258_s23 }
  0x22   : > { %p41_p7 = scmp.ge.s32.totalorder %s39_s16, 2  ;;  %p55_p8 = scmp.ne.s32.totalorder %s1258_s23, %s1254_s22 }
  0x23   : > { %p56_p9 = scmp.eq.s32.totalorder %s1270_s26, 0  ;;  %p61_p11 = scmp.ne.s32.totalorder %s1254_s22, %s1250_s21 }
  0x24   : > { %s1553_s16 = smov (%p41_p7, %s39_s16), 0  ;;  %p197_p12 = scmp.eq.s32.totalorder %s1345_s27, 1 }
  0x25   : > { %1540 = sst [smem:[#allocation21_spill]] %s1553_s16  ;;  %p1391_p10 = por %p56_p9, %p55_p8 }
  0x26   : > { %s43_s10 = ssub.s32 %s1266_s25, %s1553_s16  ;;  %p1402_p0 = por %p62_p1, %p61_p11 }
  0x27   : > { %p46_p13 = scmp.eq.s32.totalorder %s43_s10, 0  ;;  %p1406_p2 = por %p197_p12, %p55_p8 }
  0x28   : > { %p203_p4 = scmp.eq.s32.totalorder %s839_s13, 1  ;;  %p923_p7 = scmp.lt.s32.totalorder %s1270_s26, 2 }
  0x29   : > { %s1411_s19 = scalar_select %p46_p13, %s1258_s23, %s48_s17  }
  0x2a   : > { %p1413_p5 = por %p203_p4, %p61_p11  ;;  %s279_s28 = sand.u32 1, %s1258_s23  }
  0x2b   : > { %1544 = sst [smem:[#allocation22_spill]] %s1411_s19  ;;  %s847_s29 = sshll.u32 %s1266_s25, 3 }
  0x2c   : > { %s846_s30 = sshll.u32 %s279_s28, 3  ;;  %s288_s11 = scalar_lea.hbm %s1520_s0, %s847_s29 }
  0x2d   : > { %s290_s12 = sshll.u32 %s288_s11, 4  ;;  %s283_s10 = scalar_lea.vmem [#allocation2], %s846_s30  ;;  %s291_s12 = int_to_ptr.hbm [resolvable:$true] %s290_s12 }
  0x2e   : > { %s292_s2 = sshll.u32 %s283_s10, 4  ;;  %p909_p8 = pnand %p923_p7, %p1391_p10  ;;  %s293_s2 = int_to_ptr.vmem [resolvable:$true] %s292_s2 }
  0x2f   : > { %s307_s3 = scalar_lea.hbm %s1521_s1, %s847_s29  ;;  %s299_s4 = sand.u32 1, %s1270_s26  }
  0x30   : > { %s280_s5 = scalar_lea.sflag [#allocation3], %s279_s28  ;;  %s309_s16 = sshll.u32 %s307_s3, 4  ;;  %s310_s16 = int_to_ptr.hbm [resolvable:$true] %s309_s16 }
  0x31   : > { %911 = dma.hbm_to_vmem [thread:$0]  (!%p909_p8), %s291_s12, 128, %s293_s2, %s280_s5  }
  0x32   : > { %s303_s25 = scalar_lea.vmem [#allocation5], %s846_s30  ;;  %s300_s8 = scalar_lea.sflag [#allocation6], %s299_s4 }
  0x33   : > { %s311_s19 = sshll.u32 %s303_s25, 4  ;;  %320 = sbr.rel (%p1353_p3) target bundleno = 986 (0x3da), region = 44  ;;  %s312_s19 = int_to_ptr.vmem [resolvable:$true] %s311_s19 }
  0x34   : > { %914 = dma.hbm_to_vmem [thread:$0]  (!%p909_p8), %s310_s16, 128, %s312_s19, %s300_s8  }
  0x35   : > { %s1432_s18 = sand.u32 (!%p1353_p3), 1, %s1254_s22  }
  0x36   : > { %s1435_s29 = sshll.u32 (!%p1353_p3), %s1432_s18, 3  ;;  %s323_s2 = scalar_lea.sflag (!%p1353_p3), [#allocation3], %s1432_s18 }
  0x37   : > { %s326_s3 = scalar_lea.vmem (!%p1353_p3), [#allocation2], %s1435_s29 }
  0x38   : > { %1225 = dma.done.wait (%p1402_p0), %s323_s2, 128  }
  0x39   : > { %1227 = vsyncadd (%p1402_p0), %s323_s2, 4294967168  ;;  %s332_s4 = sand.u32 1, %s1345_s27   ;;  %s336_s25 = scalar_lea.vmem [#allocation5], %s1435_s29 }
  0x3a   : > { %s333_s5 = scalar_lea.sflag [#allocation6], %s332_s4 }
  0x3b   : > { %1229 = dma.done.wait (%p1402_p0), %s333_s5, 128  }
  0x3c   : > { %1231 = vsyncadd (%p1402_p0), %s333_s5, 4294967168 }
  0x3d   : > { %1233 = dma.done.wait (%p62_p1), [#allocation6], 512  }
  0x3e   : > { %1235 = vsyncadd (%p62_p1), [#allocation6], 4294966784 }
  0x3f   : > { %1237 = dma.done.wait (%p62_p1), [#allocation9], 1024  }
  0x40   : > { %1239 = vsyncadd (%p62_p1), [#allocation9], 4294966272 }
  0x41   : > { %1241 = dma.done.wait (%p62_p1), [#allocation12], 512  }
  0x42   : > { %1243 = vsyncadd (%p62_p1), [#allocation12], 4294966784  ;;  %v424_v0 = vld [vmem:[#allocation8 + $0x18] sm:$0xff]  ;;  %v423_v1 = vld [vmem:[#allocation8 + $0x10] sm:$0xff]  ;;  %vm397_vm0 = vcmask 261120   ;;  %vm473_vm1 = vcmask 130048  }
  0x43   : > { %440 = vmatpush.msra.mxu1 %v424_v0  ;;  %v396_v2 = vld [vmem:[#allocation7 + $0x18] sm:$0xff]  ;;  %v422_v3 = vld [vmem:[#allocation8 + $0x8] sm:$0xff]  ;;  %v395_v4 = vld [vmem:[#allocation7 + $0x10] sm:$0xff]  ;;  %s1278_s27 = smov 112   ;;  %vm500_vm2 = vcmask 64512   ;;  %s870_s7 = sshll.u32 %s1262_s24, 3 }
  0x44   : > { %413 = vmatpush.msra.mxu0 %v396_v2  ;;  %v394_v5 = vld [vmem:[#allocation7 + $0x8] sm:$0xff]  ;;  %v421_v6 = vld [vmem:[#allocation8] sm:$0xff]  ;;  %v392_v7 = vld [vmem:[%s336_s25] sm:$0xff]  ;;  %s692_s19 = scalar_lea.hbm %s1526_s6, %s870_s7  ;;  %s390_s28 = scalar_lea.vmem [#allocation13], %s1435_s29 }
  0x45   : > { %441 = vmatpush.msra.mxu1 %v423_v1  ;;  %v393_v8 = vld [vmem:[#allocation7] sm:$0xff]  ;;  %v451_v15 = vld [vmem:[#allocation10 + $0x18] sm:$0xff]  ;;  %v450_v16 = vld [vmem:[#allocation10 + $0x10] sm:$0xff]  ;;  %s694_s30 = sshll.u32 %s390_s28, 4  ;;  %s696_s9 = sshll.u32 %s692_s19, 4  ;;  %s695_s30 = int_to_ptr.vmem [resolvable:$true] %s694_s30  ;;  %s697_s9 = int_to_ptr.hbm [resolvable:$true] %s696_s9 }
  0x46   : > { %414 = vmatpush.msra.mxu0 %v395_v4  ;;  %v1461_v9 = vld [vmem:[%s326_s3] sm:$0xff]  ;;  %464 = vmatpush.msra.mxu2 %v451_v15  ;;  %v654_v35 = vld [vmem:[#allocation11 + $0x18] sm:$0xff]  ;;  %v653_v60 = vld [vmem:[#allocation11 + $0x10] sm:$0xff]  ;;  %s681_s11 = scalar_lea.sflag [#allocation4], %s1432_s18  ;;  %s1186_s12 = sshra.s32 %s697_s9, 4  ;;  %s1187_s12 = int_to_ptr.hbm [resolvable:$true] %s1186_s12 }
  0x47   : > { %442 = vmatpush.msra.mxu1 %v422_v3  ;;  %v449_v17 = vld [vmem:[#allocation10 + $0x8] sm:$0xff]  ;;  %v448_v18 = vld [vmem:[#allocation10] sm:$0xff]  ;;  %s1188_s24 = scalar_lea.hbm %s1187_s12, 8  ;;  %s1192_s17 = scalar_lea.hbm %s1526_s6, 16 }
  0x48   : > { %415 = vmatpush.msra.mxu0 %v394_v5  ;;  %465 = vmatpush.msra.mxu2 %v450_v16  ;;  %v549_v61 = vld [vmem:[#allocation11 + $0x8] sm:$0xff]  ;;  %v548_v62 = vld [vmem:[#allocation11] sm:$0xff]  ;;  %p1189_p1 = scmp.ne.s32.totalorder %s1187_s12, %s1188_s24  ;;  %p1193_p10 = scmp.lt.s32.totalorder %s1187_s12, %s1526_s6 }
  0x49   : > { %443 = vmatpush.msra.mxu1 %v421_v6  ;;  %p1194_p11 = scmp.lt.s32.totalorder %s1192_s17, %s1188_s24 }
  0x4a   : > { %859 = vmatmul.msk.f32.vlgmr.msra.gmra.mxu1 %vm397_vm0, %v392_v7  ;;  %416 = vmatpush.msra.mxu0 %v393_v8  ;;  %p1190_p3 = pnand %p1189_p1, %p1406_p2 }
  0x4b   : > { %858 = vmatmul.msk.f32.vlgmr.msra.gmra.mxu0 %vm397_vm0, %v1461_v9  ;;  %466 = vmatpush.msra.mxu2 %v449_v17  ;;  %p1195_p12 = por %p1194_p11, %p1193_p10 }
  0x4c   : > { %567 = vmatpush.msrb.mxu0 %v549_v61  ;;  %p1191_p9 = pneg %p1190_p3 }
  0x4d   : > { %467 = vmatpush.msra.mxu2 %v448_v18 }
  0x4e   : > { %860 = vmatmul.msk.f32.vlgmr.msra.gmra.mxu2 %vm397_vm0, %v392_v7  ;;  %568 = vmatpush.msrb.mxu0 %v548_v62  ;;  %p1196_p13 = pnand %p1195_p12, %p1191_p9 }
  0xc7   : > { %v445_v10 = vpop.f32.mrf.mxu1 }
  0xc8   : > { %576 = vrot.lane.b32.xlu0 %v445_v10, %s1278_s27  ;;  %861 = vmatpush.xpose.msk.msra.mxu3 %vm473_vm1, %v445_v10  ;;  %v418_v11 = vpop.f32.mrf.mxu0 }
  0xc9   : > { %v472_v12 = vmul.f32 0.25, %v418_v11 }
  0xcb   : > { %862 = vmatmul.msk.f32.vlgmr.msra.gmra.mxu3 %vm473_vm1, %v472_v12 }
  0xd0   : > { %574 = vrot.lane.b32.xlu0 %v472_v12, %s1278_s27 }
  0xd1   : > { %v469_v23 = vpop.f32.mrf.mxu2 }
  0xd2   : > { %543 = vmatpush.msrb.mxu3 %v469_v23 }
  0xd4   : > { %672 = vmatpush.msra.mxu3 %v654_v35 }
  0xd6   : > { %673 = vmatpush.msra.mxu3 %v653_v60 }
  0xd8   : > { %627 = vrot.lane.b32.xlu0 %v469_v23, %s1278_s27 }
 0x13a   : > { %v577_v13 = vpop.permute.xlu0 %576 }
 0x13b   : > { %865 = vmatpush.xpose.msk.msrb.mxu1 %vm473_vm1, %v577_v13 }
 0x142   : > { %v575_v14 = vpop.permute.xlu0 %574 }
 0x143   : > { %866 = vmatmul.msk.f32.vlgmr.msrb.gmra.mxu1 %vm473_vm1, %v575_v14 }
 0x14a   : > { %v628_v34 = vpop.permute.xlu0 %627 }
 0x14b   : > { %648 = vmatpush.msrb.mxu2 %v628_v34 }
 0x14e   : > { %v497_v21 = vpop.f32.mrf.mxu3 }
 0x14f   : > { %v501_v22 = vsel %vm500_vm2, %v497_v21, -inf }
 0x1c0   : > { %v599_v19 = vpop.f32.mrf.mxu1 }
 0x1c1   : > { %v602_v20 = vsel %vm500_vm2, %v599_v19, -inf }
 0x1c2   : > { %603 = vmax.xlane.f32.xlu1 %v602_v20 }
 0x1ca   : > { %502 = vmax.xlane.f32.xlu1 %v501_v22 }
 0x235   : > { %v604_v24 = vpop.xlane.xlu1 %603 }
 0x236   : > { %v605_v25 = vsub.f32 %v599_v19, %v604_v24 }
 0x238   : > { %v606_v26 = vmul.f32 1.442695, %v605_v25 }
 0x23a   : > { %984 = vpow2.f32 %v606_v26 }
 0x23d   : > { %v503_v27 = vpop.xlane.xlu1 %502 }
 0x23e   : > { %v504_v28 = vsub.f32 %v497_v21, %v503_v27 }
 0x240   : > { %v985_v29 = vpop.eup %984  ;;  %v505_v30 = vmul.f32 1.442695, %v504_v28 }
 0x241   : > { %v608_v31 = vsel %vm500_vm2, %v985_v29, 0.0 }
 0x242   : > { %986 = vpow2.f32 %v505_v30  ;;  %609 = vadd.xlane.f32.xlu2 %v608_v31 }
 0x248   : > { %v987_v32 = vpop.eup %986 }
 0x249   : > { %v507_v33 = vsel %vm500_vm2, %v987_v32, 0.0 }
 0x24a   : > { %508 = vadd.xlane.f32.xlu2 %v507_v33 }
 0x2b5   : > { %v610_v36 = vpop.xlane.xlu2 %609 }
 0x2b6   : > { %988 = vrcp.f32 %v610_v36  ;;  %v622_v41 = vand.u32 2147483648, %v610_v36  ;;  %v620_v43 = vand.u32 2147483647, %v610_v36  ;;  %vm616_vm4 = vweird.f32 %v610_v36 }
 0x2b8   : > { %v623_v46 = vor.u32 1.1754944e-38, %v622_v41  ;;  %vm621_vm6 = vcmp.eq.f32.partialorder %v620_v43, 8.507059e+37 }
 0x2bc   : > { %v989_v37 = vpop.eup %988 }
 0x2bd   : > { %v612_v38 = vmul.f32 %v989_v37, %v610_v36  ;;  %v509_v39 = vpop.xlane.xlu2 %508  ;;  %vm617_vm3 = vweird.f32 %v989_v37 }
 0x2be   : > { %990 = vrcp.f32 %v509_v39  ;;  %vm618_vm5 = vmor %vm616_vm4, %vm617_vm3  ;;  %v521_v52 = vand.u32 2147483648, %v509_v39  ;;  %v519_v54 = vand.u32 2147483647, %v509_v39  ;;  %vm515_vm8 = vweird.f32 %v509_v39 }
 0x2bf   : > { %v613_v40 = vsub.f32 1.0, %v612_v38 }
 0x2c0   : > { %v522_v56 = vor.u32 1.1754944e-38, %v521_v52  ;;  %vm520_vm10 = vcmp.eq.f32.partialorder %v519_v54, 8.507059e+37 }
 0x2c1   : > { %v614_v42 = vmul.f32 %v989_v37, %v613_v40 }
 0x2c3   : > { %v615_v44 = vadd.f32 %v989_v37, %v614_v42 }
 0x2c4   : > { %v991_v45 = vpop.eup %990 }
 0x2c5   : > { %v511_v47 = vmul.f32 %v991_v45, %v509_v39  ;;  %v619_v48 = vsel %vm618_vm5, %v989_v37, %v615_v44  ;;  %vm516_vm7 = vweird.f32 %v991_v45 }
 0x2c6   : > { %v624_v49 = vsel %vm621_vm6, %v623_v46, %v619_v48  ;;  %vm517_vm9 = vmor %vm515_vm8, %vm516_vm7 }
 0x2c7   : > { %v512_v50 = vsub.f32 1.0, %v511_v47  ;;  %v625_v51 = vmul.f32 %v985_v29, %v624_v49 }
 0x2c9   : > { %v513_v53 = vmul.f32 %v991_v45, %v512_v50  ;;  %867 = vmatmul.msk.f32.vlgmr.msrb.gmra.mxu2 %vm500_vm2, %v625_v51 }
 0x2cb   : > { %v514_v55 = vadd.f32 %v991_v45, %v513_v53 }
 0x2cd   : > { %v518_v57 = vsel %vm517_vm9, %v991_v45, %v514_v55 }
 0x2ce   : > { %v523_v58 = vsel %vm520_vm10, %v522_v56, %v518_v57 }
 0x2cf   : > { %v524_v59 = vmul.f32 %v987_v32, %v523_v58 }
 0x2d1   : > { %863 = vmatmul.msk.f32.vlgmr.msrb.gmra.mxu3 %vm500_vm2, %v524_v59 }
 0x34c   : > { %v650_v63 = vpop.f32.mrf.mxu2 }
 0x34d   : > { %868 = vmatmul.msk.f32.vlgmr.msra.gmra.mxu3 %vm473_vm1, %v650_v63 }
 0x354   : > { %v545_v0 = vpop.f32.mrf.mxu3 }
 0x355   : > { %864 = vmatmul.msk.f32.vlgmr.msrb.gmra.mxu0 %vm473_vm1, %v545_v0 }
 0x3d0   : > { %v675_v3 = vpop.f32.mrf.mxu3 }
 0x3d2   : > { %v570_v1 = vpop.f32.mrf.mxu0 }
 0x3d3   : > { %v573_v2 = vadd.f32 %v570_v1, %v1461_v9 }
 0x3d5   : > { %v678_v4 = vadd.f32 %v675_v3, %v573_v2 }
 0x3d7   : > { %679 = vst.msk [vmem:[%s390_s28] sm:$0xff] %vm397_vm0, %v678_v4 }
 0x3d8   : > { %1199 = shalt.err (!%p1196_p13)
}
 0x3d9   : > { %893 = dma.vmem_to_hbm [thread:$0]  (%p1406_p2), %s695_s30, 128, %s697_s9, %s681_s11  }
 0x3da PF: > { %s708_s18 = sand.u32 1, %s1250_s21   ;;  %p916_p0 = pnand %p845_p6, %p1413_p5 }
 0x3db   : > { %s709_s2 = scalar_lea.sflag [#allocation4], %s708_s18 }
 0x3dc   : > { %p917_p4 = pneg %p916_p0 }
 0x3de   : > { %1245 = dma.done.wait (%p917_p4), %s709_s2, 128  }
 0x3df   : > { %1247 = vsyncadd (%p917_p4), %s709_s2, 4294967168  ;;  %s27_s26 = sadd.s32 1, %s1270_s26   ;;  %s1546_s3 = sld [smem:[#allocation22_spill]] }
 0x3e0   : > { %p24_p7 = scmp.ge.s32.totalorder %s27_s26, 4   ;;  %s1547_s24 = sld [smem:[#allocation20_spill]] }
 0x3e1   : > { %s1548_s25 = sld [smem:[#allocation21_spill]]  ;;  %s1549_s21 = smov %s1254_s22 }
 0x3e2   : > { %s1550_s22 = smov %s1258_s23  ;;  %26 = sbr.rel (!%p24_p7) target bundleno = 15 (0xf), region = 118 }
 0x3e5   : > { %s1551_s23 = smov %s1546_s3 }
 0x3e7   :  { %715 = vsyncpa [#allocation3], 1 }
 0x3e8   :  { %717 = vsyncpa [#allocation3 + $0x1], 1 }
 0x3e9   :  { %718 = vsyncpa [#allocation6], 1 }
 0x3ea   :  { %720 = vsyncpa [#allocation6 + $0x1], 1 }
 0x3eb   :  { %721 = vsyncpa [#allocation9], 1 }
 0x3ec   :  { %722 = vsyncpa [#allocation12], 1 }
 0x3ed   :  { %723 = vsyncpa [#allocation4], 1 }
 0x3ee   :  { %725 = vsyncpa [#allocation4 + $0x1], 1 }

</bundles_post_ra>
